<compile_context>
chip_gen: v7x
topology: tpu7x:2x2x1
jax: 0.10.0
libtpu: 0.0.40
codegen_flags: <defaults>
</compile_context>

<pallas_src>
import jax
import jax.numpy as jnp
from jax.experimental import pallas as pl
from jax.experimental.pallas import tpu as pltpu

INPUT_SIZE = 20
HIDDEN_SIZE = 64
OUTPUT_SIZE = 1


def _round_up(n, m):
    return ((n + m - 1) // m) * m


def simple_nn_kernel(xt_ref, w1t_ref, b1c_ref, w2r_ref, b2_ref, out_ref):
    # xt_ref : (INPUT_SIZE, tb)     f32  -- batch in lanes (streamed per tile)
    # w1t_ref: (HIDDEN, INPUT_SIZE) f32  -- resident
    # b1c_ref: (HIDDEN, 1)          f32  -- resident
    # w2r_ref: (8, HIDDEN)          f32  -- row 0 = w2, rows 1..7 zero
    # b2_ref : (1, 1)               f32  -- SMEM scalar
    # out_ref: (1, tb)              f32  -- lane-dense output block

    # fc1 on the MXU: (HIDDEN, IN) @ (IN, tb) -> (HIDDEN, tb), f32 accumulation.
    h = jnp.dot(w1t_ref[...], xt_ref[...], preferred_element_type=jnp.float32)
    # Bias (broadcast along lanes) + ReLU on fully dense vregs.
    h = jnp.maximum(h + b1c_ref[...], 0.0)

    # fc2 on the MXU: (8, HIDDEN) @ (HIDDEN, tb) -> (8, tb); only row 0 is live.
    y = jnp.dot(w2r_ref[...], h, preferred_element_type=jnp.float32)[0:1, :]

    # Scalar bias + sigmoid epilogue on a lane-dense (1, tb) slab.
    out_ref[...] = jax.nn.sigmoid(y + b2_ref[0, 0]).astype(out_ref.dtype)


def simple_nn_forward(x, w1t, b1c, w2r, b2s, *, tb=8192):
    """x: (B, INPUT_SIZE) f32.  Params from prepare_params().  Returns (B, 1) f32."""
    B = x.shape[0]

    # --- batch-tile selection (VMEM-aware) ---------------------------------
    # Lane-padded VMEM cost per batch row: x_t 96 B (x2 pipeline buffers),
    # h intermediate 256 B, out 32 B (x2)  ->  ~0.75 KiB/row.  tb=8192 ~ 6 MiB,
    # inside every generation's default scoped VMEM (v5e 16 MiB is the floor).
    Bp = _round_up(B, 128)
    n_tiles = pl.cdiv(Bp, tb)
    if n_tiles == 1 and Bp >= 256:
        n_tiles = 2                       # keep both v7x TensorCores busy
    tb = _round_up(pl.cdiv(Bp, n_tiles), 128)
    Bp = n_tiles * tb                     # every block is full; no partial tiles

    # --- layout plumbing: batch into lanes ----------------------------------
    # One fused XLA transpose+pad producing (INPUT_SIZE, Bp); the zero-padded
    # columns are sliced off below.  Callers holding features as
    # (INPUT_SIZE, B) can pass them directly and skip this pass entirely.
    x_t = jnp.pad(x.T, ((0, 0), (0, Bp - B)))

    out = pl.pallas_call(
        simple_nn_kernel,
        out_shape=jax.ShapeDtypeStruct((1, Bp), jnp.float32),
        grid_spec=pltpu.PrefetchScalarGridSpec(
            num_scalar_prefetch=0,
            grid=(n_tiles,),
            in_specs=[
                # x_t: streamed per batch tile (double-buffered by the pipeline).
                pl.BlockSpec((INPUT_SIZE, tb), lambda i: (0, i)),
                # Weights / biases: constant block index -> resident in VMEM.
                pl.BlockSpec(w1t.shape, lambda i: (0, 0)),
                pl.BlockSpec(b1c.shape, lambda i: (0, 0)),
                pl.BlockSpec(w2r.shape, lambda i: (0, 0)),
                # b2: scalar in SMEM (no per-step VMEM DMA).
                pl.BlockSpec(memory_space=pltpu.MemorySpace.SMEM),
            ],
            out_specs=pl.BlockSpec((1, tb), lambda i: (0, i)),
        ),
        compiler_params=pltpu.CompilerParams(
            dimension_semantics=("parallel",),   # independent batch tiles
        ),
    )(x_t, w1t, b1c, w2r, b2s)

    return out[0, :B][:, None]


def init_params(key):
    """Logical params mimicking nn.Linear default init, stored as (in, out)."""
    k1, k2, k3, k4 = jax.random.split(key, 4)
    bound1 = 1.0 / jnp.sqrt(INPUT_SIZE)
    bound2 = 1.0 / jnp.sqrt(HIDDEN_SIZE)
    w1 = jax.random.uniform(k1, (INPUT_SIZE, HIDDEN_SIZE), jnp.float32, -bound1, bound1)
    b1 = jax.random.uniform(k2, (HIDDEN_SIZE,), jnp.float32, -bound1, bound1)
    w2 = jax.random.uniform(k3, (HIDDEN_SIZE, OUTPUT_SIZE), jnp.float32, -bound2, bound2)
    b2 = jax.random.uniform(k4, (OUTPUT_SIZE,), jnp.float32, -bound2, bound2)
    return w1, b1, w2, b2


def prepare_params(w1, b1, w2, b2):
    """Reshape logical params into the kernel's batch-in-lanes layout.

    No hidden-dim padding is needed (HIDDEN=64 lives on the sublane axis).
    w2 is embedded as row 0 of an (8, HIDDEN) block so fc2 is a well-shaped
    MXU matmul; the zero rows are discarded inside the kernel (exact).
    """
    w1t = jnp.asarray(w1.T, jnp.float32)                          # (HIDDEN, INPUT)
    b1c = jnp.asarray(b1, jnp.float32).reshape(HIDDEN_SIZE, 1)    # (HIDDEN, 1)
    w2r = jnp.zeros((8, HIDDEN_SIZE), jnp.float32).at[0].set(
        jnp.asarray(w2[:, 0], jnp.float32))                       # (8, HIDDEN)
    b2s = jnp.asarray(b2, jnp.float32).reshape(1, 1)              # (1, 1) SMEM
    return w1t, b1c, w2r, b2s


if __name__ == "__main__":
    key = jax.random.PRNGKey(0)
    kx, kp, kx2 = jax.random.split(key, 3)

    w1, b1, w2, b2 = init_params(kp)
    w1t, b1c, w2r, b2s = prepare_params(w1, b1, w2, b2)

    def reference(xv):
        return jax.nn.sigmoid(
            jnp.maximum(xv @ w1 + b1[None, :], 0.0) @ w2 + b2[None, :])

    # Small demo batch (single grid step).
    batch = 8
    x = jax.random.normal(kx, (batch, INPUT_SIZE), jnp.float32)
    out = jax.block_until_ready(simple_nn_forward(x, w1t, b1c, w2r, b2s))
    assert out.shape == (batch, OUTPUT_SIZE)
    assert jnp.allclose(out, reference(x), atol=1e-5, rtol=1e-5)

    # Ragged batch exercising the multi-step "parallel" grid + tail padding
    # (addresses the reviewer's ragged-B correctness concern).
    batch2 = 200
    x2 = jax.random.normal(kx2, (batch2, INPUT_SIZE), jnp.float32)
    out2 = jax.block_until_ready(simple_nn_forward(x2, w1t, b1c, w2r, b2s))
    assert out2.shape == (batch2, OUTPUT_SIZE)
    assert jnp.allclose(out2, reference(x2), atol=1e-5, rtol=1e-5)

    print("KERNEL_OK")
</pallas_src>

<mosaic_0001>
module attributes {stable_mosaic.version = 11 : i64} {
  func.func @simple_nn_kernel(%arg0: i32, %arg1: memref<20x128xf32, #tpu.memory_space<vmem>>, %arg2: memref<64x20xf32, #tpu.memory_space<vmem>>, %arg3: memref<64x1xf32, #tpu.memory_space<vmem>>, %arg4: memref<8x64xf32, #tpu.memory_space<vmem>>, %arg5: memref<1x1xf32, #tpu.memory_space<smem>>, %arg6: memref<1x128xf32, #tpu.memory_space<vmem>>) attributes {dimension_semantics = [#tpu.dimension_semantics<parallel>], iteration_bounds = array<i64: 1>, scalar_prefetch = 0 : i64, scratch_operands = 0 : i64, tpu.core_type = #tpu.core_type<tc>, window_params = [{transform_indices = @transform_0, window_bounds = array<i64: 20, 128>}, {pipeline_mode = #tpu.pipeline_mode<synchronous>, transform_indices = @transform_1, window_bounds = array<i64: 64, 20>}, {pipeline_mode = #tpu.pipeline_mode<synchronous>, transform_indices = @transform_2, window_bounds = array<i64: 64, 1>}, {pipeline_mode = #tpu.pipeline_mode<synchronous>, transform_indices = @transform_3, window_bounds = array<i64: 8, 64>}, {transform_indices = @transform_4, window_bounds = array<i64: 1, 1>}, {transform_indices = @transform_5, window_bounds = array<i64: 1, 128>}]} {
    %c0 = arith.constant 0 : index
    %c0_0 = arith.constant 0 : index
    %0 = vector.load %arg2[%c0, %c0_0] : memref<64x20xf32, #tpu.memory_space<vmem>>, vector<64x20xf32>
    %c0_1 = arith.constant 0 : index
    %c0_2 = arith.constant 0 : index
    %1 = vector.load %arg1[%c0_1, %c0_2] : memref<20x128xf32, #tpu.memory_space<vmem>>, vector<20x128xf32>
    %cst = arith.constant dense<0.000000e+00> : vector<64x128xf32>
    %2 = tpu.matmul %0, %1, %cst {dimension_numbers = #tpu.dot_dimension_numbers<[1], [0], [0], [1], [0, 0, 1, 1], [], []>} : vector<64x20xf32>, vector<20x128xf32>, vector<64x128xf32> -> vector<64x128xf32>
    %c0_3 = arith.constant 0 : index
    %c0_4 = arith.constant 0 : index
    %3 = vector.load %arg3[%c0_3, %c0_4] : memref<64x1xf32, #tpu.memory_space<vmem>>, vector<64x1xf32>
    %4 = vector.broadcast %3 : vector<64x1xf32> to vector<64x128xf32>
    %5 = arith.addf %2, %4 : vector<64x128xf32>
    %cst_5 = arith.constant 0.000000e+00 : f32
    %6 = vector.broadcast %cst_5 : f32 to vector<64x128xf32>
    %7 = arith.maximumf %5, %6 : vector<64x128xf32>
    %c0_6 = arith.constant 0 : index
    %c0_7 = arith.constant 0 : index
    %8 = vector.load %arg4[%c0_6, %c0_7] : memref<8x64xf32, #tpu.memory_space<vmem>>, vector<8x64xf32>
    %cst_8 = arith.constant dense<0.000000e+00> : vector<8x128xf32>
    %9 = tpu.matmul %8, %7, %cst_8 {dimension_numbers = #tpu.dot_dimension_numbers<[1], [0], [0], [1], [0, 0, 1, 1], [], []>} : vector<8x64xf32>, vector<64x128xf32>, vector<8x128xf32> -> vector<8x128xf32>
    %10 = vector.extract_strided_slice %9 {offsets = [0, 0], sizes = [1, 128], strides = [1, 1]} : vector<8x128xf32> to vector<1x128xf32>
    %c0_9 = arith.constant 0 : index
    %c0_10 = arith.constant 0 : index
    %11 = memref.load %arg5[%c0_9, %c0_10] : memref<1x1xf32, #tpu.memory_space<smem>>
    %12 = vector.broadcast %11 : f32 to vector<1x128xf32>
    %13 = arith.addf %10, %12 : vector<1x128xf32>
    %14 = arith.negf %13 : vector<1x128xf32>
    %15 = math.exp %14 : vector<1x128xf32>
    %cst_11 = arith.constant 1.000000e+00 : f32
    %16 = vector.broadcast %cst_11 : f32 to vector<1x128xf32>
    %17 = arith.addf %16, %15 : vector<1x128xf32>
    %18 = arith.divf %16, %17 : vector<1x128xf32>
    %c0_12 = arith.constant 0 : index
    %c0_13 = arith.constant 0 : index
    %19 = vector.load %arg6[%c0_12, %c0_13] : memref<1x128xf32, #tpu.memory_space<vmem>>, vector<1x128xf32>
    tpu.vector_store %arg6[%c0_12, %c0_13], %18 {strides = array<i32>} : memref<1x128xf32, #tpu.memory_space<vmem>>, vector<1x128xf32>,
    return
  }
  func.func @transform_0(%arg0: i32) -> (i32, i32) {
    %c0_i32 = arith.constant 0 : i32
    %c0_i32_0 = arith.constant 0 : i32
    return %c0_i32, %arg0 : i32, i32
  }
  func.func @transform_1(%arg0: i32) -> (i32, i32) {
    %c0_i32 = arith.constant 0 : i32
    %c0_i32_0 = arith.constant 0 : i32
    %c0_i32_1 = arith.constant 0 : i32
    return %c0_i32, %c0_i32_0 : i32, i32
  }
  func.func @transform_2(%arg0: i32) -> (i32, i32) {
    %c0_i32 = arith.constant 0 : i32
    %c0_i32_0 = arith.constant 0 : i32
    %c0_i32_1 = arith.constant 0 : i32
    return %c0_i32, %c0_i32_0 : i32, i32
  }
  func.func @transform_3(%arg0: i32) -> (i32, i32) {
    %c0_i32 = arith.constant 0 : i32
    %c0_i32_0 = arith.constant 0 : i32
    %c0_i32_1 = arith.constant 0 : i32
    return %c0_i32, %c0_i32_0 : i32, i32
  }
  func.func @transform_4(%arg0: i32) -> (i32, i32) {
    %c0_i32 = arith.constant 0 : i32
    %c0_i32_0 = arith.constant 0 : i32
    %c0_i32_1 = arith.constant 0 : i32
    return %c0_i32, %c0_i32_0 : i32, i32
  }
  func.func @transform_5(%arg0: i32) -> (i32, i32) {
    %c0_i32 = arith.constant 0 : i32
    %c0_i32_0 = arith.constant 0 : i32
    return %c0_i32, %arg0 : i32, i32
  }
}

</mosaic_0001>

<bundles_post_ra>
// kernel: tpu_custom_call.1
= control target key start
LH: loop header
LB: loop body
LE: loop exit
PB: predicated region body
PF: predicated region fallthrough
CT: control target
= control target key end

     0   :  { %vm81_vm0 = vcmask 162816   ;;  %vm106_vm1 = vcmask 1043456   ;;  %v441_v5 = vmov 0   ;;  %s561_s0 = inlined_call_operand.vmem [shape: f32[20,128], index: 0, kind: input, shape index: {}]   ;;  %s562_s1 = inlined_call_operand.vmem [shape: f32[64,20], index: 1, kind: input, shape index: {}]   ;;  %s563_s2 = inlined_call_operand.vmem [shape: f32[64,1], index: 2, kind: input, shape index: {}]   ;;  %s564_s3 = inlined_call_operand.vmem [shape: f32[8,64], index: 3, kind: input, shape index: {}]   ;;  %s565_s4 = inlined_call_operand.<no memory space> [shape: f32[1,1], index: 4, kind: input, shape index: {}]   ;;  %s566_s5 = inlined_call_operand.hbm [shape: f32[1,128], index: 5, kind: output, shape index: {}]  }
   0x1   :  { %v30_v0 = vld [vmem:[%s561_s0] sm:$0xff]  ;;  %v31_v1 = vld [vmem:[%s561_s0 + $0x8] sm:$0xff]  ;;  %v32_v4 = vld [vmem:[%s561_s0 + $0x10] sm:$0xf]  ;;  %411 = vset.pattern.permute.xlu0 %v441_v5  ;;  %412 = vset.pattern.permute.xlu1 %v441_v5 }
   0x2   :  { %v390_v2 = vpack.c.bf16 %v31_v1, %v30_v0  ;;  %v22_v3 = vld [vmem:[%s562_s1] sm:$0xff]  ;;  %v35_v7 = vld [vmem:[%s563_s2 + $0x10] sm:$0xff]  ;;  %v34_v8 = vld [vmem:[%s563_s2 + $0x8] sm:$0xff] }
   0x3   :  { %359 = vmatprep.mubr.msk.f32.mxu0 %vm81_vm0, %v22_v3  ;;  %v33_v6 = vld [vmem:[%s563_s2] sm:$0xff]  ;;  %53 = vperm.xlu1 %412, %v35_v7   ;;  %v23_v9 = vld [vmem:[%s562_s1 + $0x8] sm:$0xff]  ;;  %v36_v10 = vld [vmem:[%s563_s2 + $0x18] sm:$0xff] }
   0x4   :  { %391 = vmatprep.subr.bf16.mxu0 %v390_v2  ;;  %43 = vperm.xlu0 %411, %v33_v6  }
   0x5   :  { %393 = vmatpush3.bf16.msra.mxu0 %v390_v2 }
   0x6   :  { %357 = vmatprep.subr.msk.mxu0 %vm106_vm1, %v32_v4 }
   0x7   :  { %11 = vsyncpa [#allocation4], 0  ;;  %v24_v11 = vld [vmem:[%s562_s1 + $0x10] sm:$0xff]  ;;  %58 = vperm.xlu1 %412, %v36_v10   ;;  %v37_v12 = vld [vmem:[%s563_s2 + $0x20] sm:$0xff]  ;;  %v442_v21 = vmov 0.0|0.0   ;;  %vm443_vm2 = vmmov 0   ;;  %v299_v60 = vstv %s565_s4 }
   0x8   :  { %48 = vperm.xlu0 %411, %v34_v8   ;;  %v25_v13 = vld [vmem:[%s562_s1 + $0x18] sm:$0xff]  ;;  %v38_v14 = vld [vmem:[%s563_s2 + $0x28] sm:$0xff]  ;;  %v26_v15 = vld [vmem:[%s562_s1 + $0x20] sm:$0xff]  ;;  %394 = vmatprep.subr.bf16.mxu1 %v442_v21  ;;  %v444_v22 = vmov 0.0   ;;  %vm224_vm3 = vcmask 523264   ;;  %s445_s6 = smov [#allocation3]  }
   0x9   :  { %358 = vmatpush3.msk.msra.mxu0 %vm106_vm1, %v32_v4  ;;  %v39_v16 = vld [vmem:[%s563_s2 + $0x30] sm:$0xff]  ;;  %v27_v17 = vld [vmem:[%s562_s1 + $0x28] sm:$0xff]  ;;  %v40_v18 = vld [vmem:[%s563_s2 + $0x38] sm:$0xff]  ;;  %387 = vmatprep.mubr.msk.f32.mxu1 %vm443_vm2, %v444_v22  ;;  %s314_s7 = sshll.u32 %s445_s6, 4  ;;  %s315_s7 = int_to_ptr.vmem [resolvable:$true] %s314_s7 }
   0xa   :  { %360 = vmatmul.mubr.msk.f32.vlgmr.msra.gmra.mrb[0].mxu0 %vm81_vm0, %v23_v9  ;;  %v28_v19 = vld [vmem:[%s562_s1 + $0x30] sm:$0xff]  ;;  %v29_v20 = vld [vmem:[%s562_s1 + $0x38] sm:$0xff]  ;;  %v223_v59 = vld [vmem:[%s564_s3] sm:$0xff]  ;;  %s417_s3 = scalar_lea.vmem %s315_s7, 16  ;;  %s421_s8 = scalar_lea.vmem %s315_s7, 32 }
   0xb   :  { %362 = vmatprep.mubr.msk.f32.mxu0 %vm81_vm0, %v24_v11  ;;  %68 = vperm.xlu1 %412, %v38_v14   ;;  %p418_p0 = scmp.ne.s32.totalorder %s315_s7, %s417_s3  ;;  %p422_p1 = scmp.lt.s32.totalorder %s315_s7, %s315_s7 }
   0xc   :  { %63 = vperm.xlu0 %411, %v37_v12   ;;  %p423_p2 = scmp.lt.s32.totalorder %s421_s8, %s417_s3 }
   0xe   :  { %363 = vmatmul.mubr.msk.f32.gmra.mrb[2].mxu0 %vm81_vm0, %v25_v13  ;;  %p424_p3 = por %p423_p2, %p422_p1 }
   0xf   :  { %365 = vmatprep.mubr.msk.f32.mxu0 %vm81_vm0, %v26_v15  ;;  %78 = vperm.xlu1 %412, %v40_v18  }
  0x10   :  { %73 = vperm.xlu0 %411, %v39_v16   ;;  %p425_p4 = pnand %p424_p3, %p418_p0 }
  0x12   :  { %366 = vmatmul.mubr.msk.f32.gmra.mrb[4].mxu0 %vm81_vm0, %v27_v17 }
  0x13   :  { %368 = vmatprep.mubr.msk.f32.mxu0 %vm81_vm0, %v28_v19 }
  0x16   :  { %369 = vmatmul.mubr.msk.f32.gmra.mrb[6].mxu0 %vm81_vm0, %v29_v20 }
  0x82   :  { %v54_v24 = vpop.permute.xlu1 %53 }
  0x83   :  { %v44_v23 = vpop.permute.xlu0 %43 }
  0x86   :  { %v59_v26 = vpop.permute.xlu1 %58 }
  0x87   :  { %v49_v25 = vpop.permute.xlu0 %48 }
  0x8a   :  { %v69_v36 = vpop.permute.xlu1 %68 }
  0x8b   :  { %v64_v39 = vpop.permute.xlu0 %63 }
  0x8e   :  { %v79_v48 = vpop.permute.xlu1 %78 }
  0x8f   :  { %v74_v51 = vpop.permute.xlu0 %73 }
  0xdd   :  { %v361_v27 = vpop.f32.mrb[0].mxu0 }
  0xde   :  { %v182_v28 = vadd.f32 %v361_v27, %v49_v25  ;;  %v176_v29 = vpop.f32.mrb[1].mxu0 }
  0xdf   :  { %v177_v30 = vadd.f32 %v176_v29, %v44_v23 }
  0xe0   :  { %v216_v31 = vmax.f32 %v182_v28, 0.0 }
  0xe1   :  { %v215_v32 = vmax.f32 %v177_v30, 0.0  ;;  %v364_v33 = vpop.f32.mrb[2].mxu0 }
  0xe2   :  { %v192_v34 = vadd.f32 %v364_v33, %v59_v26  ;;  %v186_v35 = vpop.f32.mrb[3].mxu0 }
  0xe3   :  { %v187_v37 = vadd.f32 %v186_v35, %v54_v24  ;;  %v395_v38 = vpack.c.bf16 %v216_v31, %v215_v32 }
  0xe4   :  { %v218_v40 = vmax.f32 %v192_v34, 0.0 }
  0xe5   :  { %v217_v41 = vmax.f32 %v187_v37, 0.0  ;;  %v367_v42 = vpop.f32.mrb[4].mxu0  ;;  %396 = vmatpush3.bf16.msra.mxu1 %v395_v38 }
  0xe6   :  { %v202_v43 = vadd.f32 %v367_v42, %v69_v36  ;;  %v196_v44 = vpop.f32.mrb[5].mxu0  ;;  %397 = vmatprep.subr.bf16.mxu1 %v442_v21 }
  0xe7   :  { %v398_v45 = vpack.c.bf16 %v218_v40, %v217_v41  ;;  %v197_v46 = vadd.f32 %v196_v44, %v64_v39 }
  0xe8   :  { %v220_v47 = vmax.f32 %v202_v43, 0.0 }
  0xe9   :  { %v219_v49 = vmax.f32 %v197_v46, 0.0  ;;  %v370_v50 = vpop.f32.mrb[6].mxu0  ;;  %399 = vmatpush3.bf16.msra.mxu1 %v398_v45 }
  0xea   :  { %v212_v52 = vadd.f32 %v370_v50, %v79_v48  ;;  %v206_v53 = vpop.f32.mrb[7].mxu0  ;;  %400 = vmatprep.subr.bf16.mxu1 %v442_v21 }
  0xeb   :  { %v401_v54 = vpack.c.bf16 %v220_v47, %v219_v49  ;;  %v207_v55 = vadd.f32 %v206_v53, %v74_v51 }
  0xec   :  { %v222_v56 = vmax.f32 %v212_v52, 0.0 }
  0xed   :  { %v221_v57 = vmax.f32 %v207_v55, 0.0  ;;  %402 = vmatpush3.bf16.msra.mxu1 %v401_v54 }
  0xee   :  { %403 = vmatprep.subr.bf16.mxu1 %v442_v21 }
  0xef   :  { %v404_v58 = vpack.c.bf16 %v222_v56, %v221_v57 }
  0xf1   :  { %405 = vmatpush3.bf16.msra.mxu1 %v404_v58 }
  0xf4   :  { %388 = vmatmul.mubr.msk.f32.vlgmr.msra.gmra.mrb[0].mxu1 %vm224_vm3, %v223_v59 }
 0x1c7   :  { %v294_v61 = vpop.f32.mrb[0].mxu1 }
 0x1c8   :  { %v300_v62 = vadd.f32 %v299_v60, %v294_v61  ;;  %v389_v63 = vpop.f32.mrb[1].mxu1 }
 0x1ca   :  { %v332_v0 = vmul.f32 -1.442695, %v300_v62 }
 0x1cc   :  { %413 = vpow2.f32 %v332_v0 }
 0x1d6   :  { %v414_v1 = vpop.eup %413 }
 0x1d7   :  { %v304_v2 = vadd.f32 1.0, %v414_v1 }
 0x1d9   :  { %415 = vrcp.f32 %v304_v2 }
 0x1e3   :  { %v416_v3 = vpop.eup %415 }
 0x1e4   :  { %307 = vst [vmem:[#allocation3] sm:$0x1] %v416_v3 }
 0x1e5   :  { %428 = shalt.err (!%p425_p4)
}
 0x1e6   :  { %s429_s10 = scalar_lea.hbm %s566_s5, 16 }
 0x1e7   :  { %p430_p5 = scmp.ne.s32.totalorder %s566_s5, %s429_s10  ;;  %p433_p6 = scmp.lt.u32.totalorder %s429_s10, %s566_s5 }
 0x1e9   :  { %p435_p7 = pnand %p433_p6, %p430_p5 }
 0x1eb   :  { %438 = shalt.err (!%p435_p7)
}
 0x1ec   :  { %317 = dma.vmem_to_hbm [thread:$0]  %s315_s7, 16, %s566_s5, [#allocation4]  }
 0x1ed   :  { %439 = dma.done.wait [#allocation4], 16  }
 0x1ee   :  { %440 = vsyncadd [#allocation4], 4294967280 }
 0x1ef   :  { %321 = vsyncpa [#allocation4], 1 }

</bundles_post_ra>
